<compile_context>
chip_gen: v6e
topology: v6e:2x2x1
jax: 0.10.0
libtpu: 0.0.40
codegen_flags: <defaults>
</compile_context>

<pallas_src>
import math
import functools

import jax
import jax.numpy as jnp
from jax import lax
from jax.experimental import pallas as pl
from jax.experimental.pallas import tpu as pltpu


# --------------------------------------------------------------------------
# Device-derived VMEM budget (v5e/v6e: 128 MiB, v7x: 64 MiB)
# --------------------------------------------------------------------------
def _vmem_budget_bytes():
    cap = 64 * 1024 * 1024  # conservative fallback (v7x size)
    try:
        info = pltpu.get_tpu_info()
        cap = int(getattr(info, "vmem_capacity_bytes", cap))
    except Exception:
        pass
    return (cap * 3) // 4


_VMEM_LIMIT = _vmem_budget_bytes()


# --------------------------------------------------------------------------
# Tile-size helpers (respect the (8, 128) block constraint: a block dim in the
# last two positions must be a multiple of 8 / 128 respectively, or equal the
# full array dim).
# --------------------------------------------------------------------------
def _pick_sublane_block(dim, candidates=(512, 256, 128, 64, 32, 16, 8)):
    for c in candidates:
        if dim % c == 0:
            return c
    return dim  # full dim is always legal


def _pick_lane_block(dim, candidates=(512, 384, 256, 128)):
    for c in candidates:
        if dim % c == 0:
            return c
    return dim  # full dim is always legal


# --------------------------------------------------------------------------
# Linear layer  y = x @ Wt + b   (Wt already = W.T, b is float32 (1, N))
# Preferred path: single K step (TK = K) -> no accumulator read-modify-write.
# Fallback path: K-tiled with a VMEM f32 accumulator (very large K only).
# --------------------------------------------------------------------------
def _linear_kernel(x_ref, wt_ref, b_ref, o_ref):
    acc = jnp.dot(x_ref[...], wt_ref[...], preferred_element_type=jnp.float32)
    o_ref[...] = (acc + b_ref[...]).astype(o_ref.dtype)


def _linear_kernel_ktiled(x_ref, wt_ref, b_ref, o_ref, acc_ref):
    ks = pl.program_id(2)

    @pl.when(ks == 0)
    def _():
        acc_ref[...] = jnp.zeros(acc_ref.shape, acc_ref.dtype)

    acc_ref[...] += jnp.dot(x_ref[...], wt_ref[...],
                            preferred_element_type=jnp.float32)

    @pl.when(ks == pl.num_programs(2) - 1)
    def _():
        o_ref[...] = (acc_ref[...] + b_ref[...]).astype(o_ref.dtype)


def _single_k_fits(tm, tn, k, itemsize, n_streams=1):
    # Double-buffered inputs + double-buffered outputs + some headroom for the
    # f32 partials; keep the estimate under half the scoped budget.
    need = 2 * (tm * k + n_streams * k * tn) * itemsize
    need += 2 * n_streams * tm * tn * itemsize + n_streams * tm * tn * 4
    return need <= _VMEM_LIMIT // 2


def linear(x, wt, b):
    """x: (M, K); wt: (K, N) pre-transposed weight; b: (1, N) float32."""
    M, K = x.shape
    N = wt.shape[1]
    TM = _pick_sublane_block(M)
    TN = _pick_lane_block(N)
    itemsize = jnp.dtype(x.dtype).itemsize

    if _single_k_fits(TM, TN, K, itemsize):
        return pl.pallas_call(
            _linear_kernel,
            out_shape=jax.ShapeDtypeStruct((M, N), x.dtype),
            grid=(M // TM, N // TN),
            in_specs=[
                pl.BlockSpec((TM, K), lambda i, j: (i, 0)),
                pl.BlockSpec((K, TN), lambda i, j: (0, j)),
                pl.BlockSpec((1, TN), lambda i, j: (0, j)),
            ],
            out_specs=pl.BlockSpec((TM, TN), lambda i, j: (i, j)),
            compiler_params=pltpu.CompilerParams(
                dimension_semantics=("parallel", "parallel"),
                vmem_limit_bytes=_VMEM_LIMIT),
        )(x, wt, b)

    TK = _pick_lane_block(K, (1024, 512, 256, 128))
    return pl.pallas_call(
        _linear_kernel_ktiled,
        out_shape=jax.ShapeDtypeStruct((M, N), x.dtype),
        grid=(M // TM, N // TN, K // TK),
        in_specs=[
            pl.BlockSpec((TM, TK), lambda i, j, k: (i, k)),
            pl.BlockSpec((TK, TN), lambda i, j, k: (k, j)),
            pl.BlockSpec((1, TN), lambda i, j, k: (0, j)),
        ],
        out_specs=pl.BlockSpec((TM, TN), lambda i, j, k: (i, j)),
        scratch_shapes=[pltpu.VMEM((TM, TN), jnp.float32)],
        compiler_params=pltpu.CompilerParams(
            dimension_semantics=("parallel", "parallel", "arbitrary"),
            vmem_limit_bytes=_VMEM_LIMIT),
    )(x, wt, b)


# --------------------------------------------------------------------------
# Fused QKV projection for SELF-attention: the shared activation tile is
# DMA'd ONCE per grid step and driven through three weight streams.
# --------------------------------------------------------------------------
def _qkv_shared_kernel(x_ref, wqt_ref, wkt_ref, wvt_ref,
                       bq_ref, bk_ref, bv_ref,
                       oq_ref, ok_ref, ov_ref):
    x = x_ref[...]
    oq_ref[...] = (jnp.dot(x, wqt_ref[...], preferred_element_type=jnp.float32)
                   + bq_ref[...]).astype(oq_ref.dtype)
    ok_ref[...] = (jnp.dot(x, wkt_ref[...], preferred_element_type=jnp.float32)
                   + bk_ref[...]).astype(ok_ref.dtype)
    ov_ref[...] = (jnp.dot(x, wvt_ref[...], preferred_element_type=jnp.float32)
                   + bv_ref[...]).astype(ov_ref.dtype)


def qkv_projection_shared(x, wqt, wkt, wvt, bq, bk, bv):
    """x: (M, K) shared activation; weights (K, N) pre-transposed; biases (1, N) f32."""
    M, K = x.shape
    N = wqt.shape[1]
    TM = _pick_sublane_block(M, (256, 128, 64, 32, 16, 8))
    TN = _pick_lane_block(N)
    itemsize = jnp.dtype(x.dtype).itemsize

    if not _single_k_fits(TM, TN, K, itemsize, n_streams=3):
        # Very large d_model: fall back to three (still tiled/pipelined) linears.
        return linear(x, wqt, bq), linear(x, wkt, bk), linear(x, wvt, bv)

    x_spec = pl.BlockSpec((TM, K), lambda i, j: (i, 0))
    w_spec = pl.BlockSpec((K, TN), lambda i, j: (0, j))
    b_spec = pl.BlockSpec((1, TN), lambda i, j: (0, j))
    o_spec = pl.BlockSpec((TM, TN), lambda i, j: (i, j))
    out_sds = jax.ShapeDtypeStruct((M, N), x.dtype)

    return pl.pallas_call(
        _qkv_shared_kernel,
        out_shape=(out_sds, out_sds, out_sds),
        grid=(M // TM, N // TN),
        in_specs=[x_spec, w_spec, w_spec, w_spec, b_spec, b_spec, b_spec],
        out_specs=(o_spec, o_spec, o_spec),
        compiler_params=pltpu.CompilerParams(
            dimension_semantics=("parallel", "parallel"),
            vmem_limit_bytes=_VMEM_LIMIT),
    )(x, wqt, wkt, wvt, bq, bk, bv)


# --------------------------------------------------------------------------
# Flash-style multi-head attention.
#   grid = (B, Sq/TQ, Sk/TKV); KV axis last ("arbitrary") with online softmax.
#   Heads are processed with a static lane-slice loop (no reshape / transpose
#   relayouts); MXU operands are always bf16, stats & accumulation are f32.
# --------------------------------------------------------------------------
def _attn_kernel(q_ref, k_ref, v_ref, o_ref, m_sc, l_sc, acc_sc,
                 *, n_heads, d_k, scale):
    kj = pl.program_id(2)

    @pl.when(kj == 0)
    def _():
        m_sc[...] = jnp.full(m_sc.shape, -jnp.inf, m_sc.dtype)
        l_sc[...] = jnp.zeros(l_sc.shape, l_sc.dtype)
        acc_sc[...] = jnp.zeros(acc_sc.shape, acc_sc.dtype)

    for h in range(n_heads):
        sl = slice(h * d_k, (h + 1) * d_k)
        # Scale folded into q (TQ*d_k mults, not H*TQ*TKV); bf16 MXU operands.
        q_h = (q_ref[0, :, sl] * scale).astype(jnp.bfloat16)
        k_h = k_ref[0, :, sl].astype(jnp.bfloat16)
        v_h = v_ref[0, :, sl].astype(jnp.bfloat16)

        # s[i, j] = sum_d q_h[i, d] * k_h[j, d]  (no explicit K^T copy)
        s = lax.dot_general(q_h, k_h,
                            dimension_numbers=(((1,), (1,)), ((), ())),
                            preferred_element_type=jnp.float32)   # (TQ, TKV) f32

        m_prev = m_sc[h]                                          # (TQ, 1) f32
        m_new = jnp.maximum(m_prev, jnp.max(s, axis=-1, keepdims=True))
        alpha = jnp.exp(m_prev - m_new)
        p = jnp.exp(s - m_new)
        l_sc[h] = alpha * l_sc[h] + jnp.sum(p, axis=-1, keepdims=True)
        acc_sc[:, sl] = alpha * acc_sc[:, sl] + lax.dot_general(
            p.astype(jnp.bfloat16), v_h,
            dimension_numbers=(((1,), (0,)), ((), ())),
            preferred_element_type=jnp.float32)                   # (TQ, d_k) f32
        m_sc[h] = m_new
        # TODO(synk): training-mode dropout on p not implemented (eval = identity).
        # TODO(synk): optional attention mask not implemented (mask=None path).

    @pl.when(kj == pl.num_programs(2) - 1)
    def _():
        # Exact per-row normalization (cheap), then ONE lane-dense output store.
        for h in range(n_heads):
            sl = slice(h * d_k, (h + 1) * d_k)
            acc_sc[:, sl] = acc_sc[:, sl] * (1.0 / l_sc[h])
        o_ref[0] = acc_sc[...].astype(o_ref.dtype)


def attention(q, k, v, n_heads):
    """q: (B, Sq, d_model), k/v: (B, Sk, d_model) -> (B, Sq, d_model)."""
    B, Sq, d_model = q.shape
    Sk = k.shape[1]
    d_k = d_model // n_heads
    # Keep Q/KV tile extents large (d_k contraction is short; big free dims + bf16
    # keep the MXU busy) while VMEM stays O(TQ * (TKV + d_model)).
    TQ = _pick_sublane_block(Sq, (256, 128, 64, 32, 16, 8))
    TKV = _pick_sublane_block(Sk, (512, 256, 128, 64, 32, 16, 8))

    kernel = functools.partial(_attn_kernel, n_heads=n_heads, d_k=d_k,
                               scale=1.0 / math.sqrt(d_k))
    return pl.pallas_call(
        kernel,
        out_shape=jax.ShapeDtypeStruct((B, Sq, d_model), q.dtype),
        grid=(B, Sq // TQ, Sk // TKV),
        in_specs=[
            pl.BlockSpec((1, TQ, d_model), lambda b, qi, kj: (b, qi, 0)),
            pl.BlockSpec((1, TKV, d_model), lambda b, qi, kj: (b, kj, 0)),
            pl.BlockSpec((1, TKV, d_model), lambda b, qi, kj: (b, kj, 0)),
        ],
        out_specs=pl.BlockSpec((1, TQ, d_model), lambda b, qi, kj: (b, qi, 0)),
        scratch_shapes=[
            pltpu.VMEM((n_heads, TQ, 1), jnp.float32),   # running max
            pltpu.VMEM((n_heads, TQ, 1), jnp.float32),   # running denom
            pltpu.VMEM((TQ, d_model), jnp.float32),      # context accumulator
        ],
        compiler_params=pltpu.CompilerParams(
            dimension_semantics=("parallel", "parallel", "arbitrary"),
            vmem_limit_bytes=_VMEM_LIMIT),
    )(q, k, v)


# --------------------------------------------------------------------------
# Module wrapper (only free reshapes in JAX glue; no transposes)
# --------------------------------------------------------------------------
def multi_head_attention(params, query, key, value, n_heads,
                         compute_dtype=jnp.float32):
    """MultiHeadAttention forward (eval mode, mask=None).

    compute_dtype=jnp.bfloat16 is recommended on v5e, v6e AND v7x (the MXU is
    bf16-native on all three); f32 accumulation, f32 biases and f32 softmax
    stats are kept in every mode.
    """
    B, Sq, d_model = query.shape
    Sk = key.shape[1]

    wq = params["wq_t"].astype(compute_dtype)
    wk = params["wk_t"].astype(compute_dtype)
    wv = params["wv_t"].astype(compute_dtype)
    wo = params["wo_t"].astype(compute_dtype)
    # Biases stay float32 and are added to the f32 accumulator inside the kernels.
    bq, bk, bv, bo = params["bq"], params["bk"], params["bv"], params["bo"]

    xq = query.astype(compute_dtype).reshape(B * Sq, d_model)
    if key is query and value is query:
        # Self-attention: stream the activation ONCE through the fused projection.
        q2, k2, v2 = qkv_projection_shared(xq, wq, wk, wv, bq, bk, bv)
    else:
        xk = key.astype(compute_dtype).reshape(B * Sk, d_model)
        xv = value.astype(compute_dtype).reshape(B * Sk, d_model)
        q2 = linear(xq, wq, bq)
        k2 = linear(xk, wk, bk)
        v2 = linear(xv, wv, bv)

    q3 = q2.reshape(B, Sq, d_model)
    k3 = k2.reshape(B, Sk, d_model)
    v3 = v2.reshape(B, Sk, d_model)

    attn = attention(q3, k3, v3, n_heads)                    # (B, Sq, d_model)

    out = linear(attn.reshape(B * Sq, d_model), wo, bo)
    return out.reshape(B, Sq, d_model).astype(query.dtype)


def init_params(key, d_model):
    """nn.Linear-style init U(-1/sqrt(fan_in), 1/sqrt(fan_in)).

    Weights stored pre-transposed (W.T) so the forward pass never pays an XLA
    transpose; biases stored as float32 (1, d_model) rows.
    """
    ks = jax.random.split(key, 8)
    bound = 1.0 / math.sqrt(d_model)

    def u(k, shape):
        return jax.random.uniform(k, shape, jnp.float32, -bound, bound)

    wq, wk, wv, wo = (u(ks[i], (d_model, d_model)) for i in range(4))
    bq, bk, bv, bo = (u(ks[4 + i], (d_model,)) for i in range(4))
    return {
        "wq_t": wq.T, "wk_t": wk.T, "wv_t": wv.T, "wo_t": wo.T,
        "bq": bq.reshape(1, -1), "bk": bk.reshape(1, -1),
        "bv": bv.reshape(1, -1), "bo": bo.reshape(1, -1),
    }


# --------------------------------------------------------------------------
# Pure-JAX reference (correctness sanity check)
# --------------------------------------------------------------------------
def reference_mha(params, query, key, value, n_heads):
    B, Sq, d_model = query.shape
    d_k = d_model // n_heads

    def lin(x, wt, b):
        return x @ wt + b

    q = lin(query, params["wq_t"], params["bq"]).reshape(B, Sq, n_heads, d_k).transpose(0, 2, 1, 3)
    k = lin(key, params["wk_t"], params["bk"]).reshape(B, -1, n_heads, d_k).transpose(0, 2, 1, 3)
    v = lin(value, params["wv_t"], params["bv"]).reshape(B, -1, n_heads, d_k).transpose(0, 2, 1, 3)
    scores = jnp.einsum("bhqd,bhkd->bhqk", q, k) / math.sqrt(d_k)
    p = jax.nn.softmax(scores, axis=-1)
    attn = jnp.einsum("bhqk,bhkd->bhqd", p, v)
    attn = attn.transpose(0, 2, 1, 3).reshape(B, Sq, d_model)
    return lin(attn, params["wo_t"], params["bo"])


if __name__ == "__main__":
    B, S, d_model, n_heads = 2, 8, 32, 4

    root = jax.random.PRNGKey(0)
    kp, kq, kk, kv = jax.random.split(root, 4)
    params = init_params(kp, d_model)

    query = jax.random.normal(kq, (B, S, d_model), jnp.float32)
    key = jax.random.normal(kk, (B, S, d_model), jnp.float32)
    value = jax.random.normal(kv, (B, S, d_model), jnp.float32)

    ref = reference_mha(params, query, key, value, n_heads)

    # General (distinct q/k/v) path: f32 projections, bf16 MXU attention operands
    # with f32 accumulation -> tolerance reflects the bf16 attention matmuls only.
    out = multi_head_attention(params, query, key, value, n_heads)
    out = jax.block_until_ready(out)
    assert out.shape == (B, S, d_model)
    assert jnp.allclose(out, ref, atol=2e-2, rtol=2e-2), "f32 path mismatch vs reference"

    # Self-attention fast path (shared activation -> fused QKV projection kernel).
    ref_self = reference_mha(params, query, query, query, n_heads)
    out_self = multi_head_attention(params, query, query, query, n_heads)
    out_self = jax.block_until_ready(out_self)
    assert jnp.allclose(out_self, ref_self, atol=2e-2, rtol=2e-2), "self-attn path mismatch"

    # bf16 everywhere (recommended on v5e/v6e/v7x); f32 accumulation + f32 stats.
    out_bf16 = multi_head_attention(params, query, key, value, n_heads,
                                    compute_dtype=jnp.bfloat16)
    out_bf16 = jax.block_until_ready(out_bf16).astype(jnp.float32)
    assert jnp.allclose(out_bf16, ref, atol=1e-1, rtol=1e-1), "bf16 path mismatch vs reference"

    print("KERNEL_OK")
</pallas_src>

<mosaic_0001>
module attributes {stable_mosaic.version = 11 : i64} {
  func.func @_linear_kernel(%arg0: i32, %arg1: i32, %arg2: memref<16x32xf32, #tpu.memory_space<vmem>>, %arg3: memref<32x32xf32, #tpu.memory_space<vmem>>, %arg4: memref<1x32xf32, #tpu.memory_space<vmem>>, %arg5: memref<16x32xf32, #tpu.memory_space<vmem>>) attributes {dimension_semantics = [#tpu.dimension_semantics<parallel>, #tpu.dimension_semantics<parallel>], iteration_bounds = array<i64: 1, 1>, scalar_prefetch = 0 : i64, scratch_operands = 0 : i64, tpu.core_type = #tpu.core_type<tc>, window_params = [{transform_indices = @transform_0, window_bounds = array<i64: 16, 32>}, {transform_indices = @transform_1, window_bounds = array<i64: 32, 32>}, {transform_indices = @transform_2, window_bounds = array<i64: 1, 32>}, {transform_indices = @transform_3, window_bounds = array<i64: 16, 32>}]} {
    %c0 = arith.constant 0 : index
    %c0_0 = arith.constant 0 : index
    %0 = vector.load %arg2[%c0, %c0_0] : memref<16x32xf32, #tpu.memory_space<vmem>>, vector<16x32xf32>
    %c0_1 = arith.constant 0 : index
    %c0_2 = arith.constant 0 : index
    %1 = vector.load %arg3[%c0_1, %c0_2] : memref<32x32xf32, #tpu.memory_space<vmem>>, vector<32x32xf32>
    %cst = arith.constant dense<0.000000e+00> : vector<16x32xf32>
    %2 = tpu.matmul %0, %1, %cst {dimension_numbers = #tpu.dot_dimension_numbers<[1], [0], [0], [1], [0, 0, 1, 1], [], []>} : vector<16x32xf32>, vector<32x32xf32>, vector<16x32xf32> -> vector<16x32xf32>
    %c0_3 = arith.constant 0 : index
    %c0_4 = arith.constant 0 : index
    %3 = vector.load %arg4[%c0_3, %c0_4] : memref<1x32xf32, #tpu.memory_space<vmem>>, vector<1x32xf32>
    %4 = vector.broadcast %3 : vector<1x32xf32> to vector<16x32xf32>
    %5 = arith.addf %2, %4 : vector<16x32xf32>
    %c0_5 = arith.constant 0 : index
    %c0_6 = arith.constant 0 : index
    %6 = vector.load %arg5[%c0_5, %c0_6] : memref<16x32xf32, #tpu.memory_space<vmem>>, vector<16x32xf32>
    tpu.vector_store %arg5[%c0_5, %c0_6], %5 {strides = array<i32>} : memref<16x32xf32, #tpu.memory_space<vmem>>, vector<16x32xf32>,
    return
  }
  func.func @transform_0(%arg0: i32, %arg1: i32) -> (i32, i32) {
    %c0_i32 = arith.constant 0 : i32
    %c0_i32_0 = arith.constant 0 : i32
    return %arg0, %c0_i32 : i32, i32
  }
  func.func @transform_1(%arg0: i32, %arg1: i32) -> (i32, i32) {
    %c0_i32 = arith.constant 0 : i32
    %c0_i32_0 = arith.constant 0 : i32
    return %c0_i32, %arg1 : i32, i32
  }
  func.func @transform_2(%arg0: i32, %arg1: i32) -> (i32, i32) {
    %c0_i32 = arith.constant 0 : i32
    %c0_i32_0 = arith.constant 0 : i32
    return %c0_i32, %arg1 : i32, i32
  }
  func.func @transform_3(%arg0: i32, %arg1: i32) -> (i32, i32) {
    %c0_i32 = arith.constant 0 : i32
    return %arg0, %arg1 : i32, i32
  }
}

</mosaic_0001>

<bundles_post_ra>
// kernel: tpu_custom_call.1
= control target key start
LH: loop header
LB: loop body
LE: loop exit
PB: predicated region body
PF: predicated region fallthrough
CT: control target
= control target key end

     0   :  { %8 = vsyncpa [#allocation3], 0  ;;  %s299_s0 = inlined_call_operand.hbm [shape: f32[16,32], index: 0, kind: input, shape index: {}]   ;;  %s300_s1 = inlined_call_operand.hbm [shape: f32[32,32], index: 1, kind: input, shape index: {}]   ;;  %s301_s2 = inlined_call_operand.vmem [shape: f32[1,32], index: 2, kind: input, shape index: {}]   ;;  %s302_s3 = inlined_call_operand.hbm [shape: f32[16,32], index: 3, kind: output, shape index: {}]  }
   0x1   :  { %9 = vsyncpa [#allocation6], 0 }
   0x2   :  { %10 = vsyncpa [#allocation4], 0  ;;  %s249_s12 = smov [#allocation2]  }
   0x3   :  { %s16_s13 = sshll.u32 %s249_s12, 4  ;;  %s17_s13 = int_to_ptr.vmem [resolvable:$true] %s16_s13 }
   0x4   :  { %s191_s14 = scalar_lea.vmem %s17_s13, 256  ;;  %p196_p1 = scmp.lt.s32.totalorder %s17_s13, %s17_s13 }
   0x5   :  { %p192_p0 = scmp.ne.s32.totalorder %s17_s13, %s191_s14  ;;  %p197_p2 = scmp.lt.s32.totalorder %s191_s14, %s191_s14 }
   0x7   :  { %p198_p3 = por %p197_p2, %p196_p1 }
   0x9   :  { %p199_p4 = pnand %p198_p3, %p192_p0 }
   0xb   :  { %202 = shalt.err (!%p199_p4)
}
   0xc   :  { %s250_s15 = smov 128   ;;  %s251_s16 = smov 8  }
   0xd   :  { %22 = dma.hbm_to_vmem [thread:$0]  %s299_s0, 256, %s17_s13, [#allocation3], %s250_s15, %s250_s15, %s251_s16  }
   0xe   :  { %s252_s19 = smov [#allocation5]  }
   0xf   :  { %s28_s20 = sshll.u32 %s252_s19, 4  ;;  %s29_s20 = int_to_ptr.vmem [resolvable:$true] %s28_s20 }
  0x10   :  { %s211_s21 = scalar_lea.vmem %s29_s20, 512  ;;  %p216_p6 = scmp.lt.s32.totalorder %s29_s20, %s29_s20 }
  0x11   :  { %p212_p5 = scmp.ne.s32.totalorder %s29_s20, %s211_s21  ;;  %p217_p7 = scmp.lt.s32.totalorder %s211_s21, %s211_s21 }
  0x13   :  { %p218_p8 = por %p217_p7, %p216_p6 }
  0x15   :  { %p219_p9 = pnand %p218_p8, %p212_p5 }
  0x17   :  { %222 = shalt.err (!%p219_p9)
}
  0x18   :  { %34 = dma.hbm_to_vmem [thread:$0]  %s300_s1, 512, %s29_s20, [#allocation6], %s250_s15, %s250_s15, %s251_s16  }
  0x19   :  { %243 = dma.done.wait [#allocation3], 256  }
  0x1a   :  { %244 = vsyncadd [#allocation3], 4294967040 }
  0x1b   :  { %245 = dma.done.wait [#allocation6], 512  }
  0x1c   :  { %246 = vsyncadd [#allocation6], 4294966784  ;;  %vm56_vm0 = vcmask 261120   ;;  %v48_v0 = vld [vmem:[#allocation5 + $0x18] sm:$0xff]  ;;  %v47_v1 = vld [vmem:[#allocation5 + $0x10] sm:$0xff]  ;;  %s253_s24 = smov [#allocation7]  }
  0x1d   :  { %167 = vmatprep.subr.mxu0 %v48_v0  ;;  %v43_v2 = vld [vmem:[#allocation2] sm:$0xff]  ;;  %v46_v3 = vld [vmem:[#allocation5 + $0x8] sm:$0xff]  ;;  %v45_v4 = vld [vmem:[#allocation5] sm:$0xff]  ;;  %s145_s25 = sshll.u32 %s253_s24, 4  ;;  %s146_s25 = int_to_ptr.vmem [resolvable:$true] %s145_s25 }
  0x1e   :  { %168 = vmatpush3.msra.mxu0 %v48_v0  ;;  %175 = vmatprep.mubr.msk.f32.mxu0 %vm56_vm0, %v43_v2  ;;  %v44_v5 = vld [vmem:[#allocation2 + $0x8] sm:$0xff]  ;;  %v158_v6 = vld [vmem:[%s301_s2] ss:$0 sm:$0xff]  ;;  %s223_s26 = scalar_lea.vmem %s146_s25, 256  ;;  %p228_p11 = scmp.lt.s32.totalorder %s146_s25, %s146_s25 }
  0x1f   :  { %169 = vmatprep.subr.mxu0 %v47_v1  ;;  %p224_p10 = scmp.ne.s32.totalorder %s146_s25, %s223_s26  ;;  %p229_p12 = scmp.lt.s32.totalorder %s223_s26, %s223_s26 }
  0x20   :  { %170 = vmatpush3.msra.mxu0 %v47_v1 }
  0x21   :  { %171 = vmatprep.subr.mxu0 %v46_v3  ;;  %p230_p13 = por %p229_p12, %p228_p11 }
  0x22   :  { %172 = vmatpush3.msra.mxu0 %v46_v3 }
  0x23   :  { %173 = vmatprep.subr.mxu0 %v45_v4  ;;  %p231_p0 = pnand %p230_p13, %p224_p10 }
  0x24   :  { %174 = vmatpush3.msra.mxu0 %v45_v4 }
  0x25   :  { %176 = vmatmul.mubr.msk.f32.vlgmr.msra.gmra.mxu0 %vm56_vm0, %v44_v5 }
  0xe5   :  { %v177_v7 = vpop.f32.mrf.mxu0 }
  0xe6   :  { %v135_v8 = vadd.f32 %v177_v7, %v158_v6 }
  0xe7   :  { %v129_v9 = vpop.f32.mrf.mxu0 }
  0xe8   :  { %139 = vst.msk [vmem:[#allocation7 + $0x8] sm:$0xff] %vm56_vm0, %v135_v8  ;;  %v130_v10 = vadd.f32 %v158_v6, %v129_v9 }
  0xea   :  { %138 = vst.msk [vmem:[#allocation7] sm:$0xff] %vm56_vm0, %v130_v10 }
  0xeb   :  { %234 = shalt.err (!%p231_p0)
}
  0xec   :  { %151 = dma.vmem_to_hbm [thread:$0]  %s146_s25, 256, %s302_s3, [#allocation4], %s250_s15, %s250_s15, %s251_s16  }
  0xed   :  { %247 = dma.done.wait [#allocation4], 256  }
  0xee   :  { %248 = vsyncadd [#allocation4], 4294967040 }
  0xef   :  { %155 = vsyncpa [#allocation3], 1 }
  0xf0   :  { %156 = vsyncpa [#allocation6], 1 }
  0xf1   :  { %157 = vsyncpa [#allocation4], 1 }

</bundles_post_ra>
